<compile_context>
chip_gen: v7x
topology: tpu7x:2x2x1
jax: 0.10.0
libtpu: 0.0.40
codegen_flags: <defaults>
</compile_context>

<pallas_src>
import jax
import jax.numpy as jnp
from jax.experimental import pallas as pl
from jax.experimental.pallas import tpu as pltpu


def discriminator_kernel(x_ref, w1_ref, b1_ref, w2_ref, b2_ref, w3_ref, b3_ref, o_ref):
    # Layer 1: Linear(input_dim, 256) + ReLU.
    # x arrives f32 from HBM; cast to bf16 in-register so the MXU runs single-pass bf16,
    # accumulate in f32.
    x_bf = x_ref[...].astype(jnp.bfloat16)
    h1 = jnp.dot(x_bf, w1_ref[...], preferred_element_type=jnp.float32) + b1_ref[...]
    h1 = jnp.maximum(h1, 0.0)

    # Layer 2: Linear(256, 128) + ReLU.  Cast activation to bf16 (w2 already bf16), f32 acc.
    h2 = jnp.dot(h1.astype(jnp.bfloat16), w2_ref[...],
                 preferred_element_type=jnp.float32) + b2_ref[...]
    h2 = jnp.maximum(h2, 0.0)

    # Layer 3: Linear(128, 1) + Sigmoid.  N=1 matmul wastes the MXU; do it as a
    # VPU multiply + lane reduction instead (w3 presented as a (1, 128) f32 row).
    z = jnp.sum(h2 * w3_ref[...], axis=-1, keepdims=True) + b3_ref[...]
    o_ref[...] = jax.nn.sigmoid(z)


def discriminator_forward(x, params, *, tb=1024):
    """Run the fused MLP kernel. x: (B, input_dim) float32 -> (B, 1) float32."""
    w1, b1, w2, b2, w3, b3 = params
    B, D = x.shape

    # Batch tile: cap at `tb`, keep it a multiple of 16 (bf16 sublane packing of the casted x).
    TB = min(tb, ((B + 15) // 16) * 16)
    TB = ((TB + 15) // 16) * 16
    Bp = ((B + TB - 1) // TB) * TB          # pad batch so the grid divides evenly
    if Bp != B:
        x = jnp.pad(x, ((0, Bp - B), (0, 0)))

    # Weights streamed once and held VMEM-resident: bf16 for the two MXU layers
    # (halves their VMEM footprint); the final-layer row + all biases stay f32
    # for the f32 VPU epilogue.
    w1_bf = w1.astype(jnp.bfloat16)
    w2_bf = w2.astype(jnp.bfloat16)
    w3_row = w3.reshape(1, -1).astype(jnp.float32)     # (1, 128)

    grid = (pl.cdiv(Bp, TB),)

    # Weights/biases: full-array blocks, constant index_map -> no re-fetch across grid steps.
    const = lambda a: pl.BlockSpec(a.shape, lambda i: (0,) * a.ndim)

    flops = 2 * Bp * (D * 256 + 256 * 128 + 128 * 1)
    bytes_accessed = (
        Bp * D * 4 + Bp * 4                                  # x stream (f32) + output
        + (w1_bf.size + w2_bf.size) * 2                      # bf16 weights
        + (b1.size + b2.size + w3_row.size + b3.size) * 4    # f32 params
    )

    out = pl.pallas_call(
        discriminator_kernel,
        out_shape=jax.ShapeDtypeStruct((Bp, 1), jnp.float32),
        grid=grid,
        in_specs=[
            pl.BlockSpec((TB, D), lambda i: (i, 0)),   # x: tiled along batch, f32 stream
            const(w1_bf), const(b1),
            const(w2_bf), const(b2),
            const(w3_row), const(b3),
        ],
        out_specs=pl.BlockSpec((TB, 1), lambda i: (i, 0)),
        compiler_params=pltpu.CompilerParams(
            dimension_semantics=("parallel",),          # 2 TCs on v7x; no-op on v5e/v6e
        ),
        cost_estimate=pl.CostEstimate(
            flops=flops,
            transcendentals=Bp,            # ~one exp per row for the sigmoid
            bytes_accessed=bytes_accessed,
        ),
    )(x, w1_bf, b1, w2_bf, b2, w3_row, b3)

    return out[:B]


def init_params(key, input_dim):
    """Deterministic init mimicking torch.nn.Linear default (U[-1/sqrt(fan_in), 1/sqrt(fan_in)])."""
    dims = [(input_dim, 256), (256, 128), (128, 1)]
    params = []
    for (fan_in, fan_out) in dims:
        key, kw, kb = jax.random.split(key, 3)
        bound = 1.0 / (fan_in ** 0.5)
        w = jax.random.uniform(kw, (fan_in, fan_out), jnp.float32, -bound, bound)
        b = jax.random.uniform(kb, (1, fan_out), jnp.float32, -bound, bound)
        params += [w, b]
    return tuple(params)


def reference_forward_bf16(x, params):
    """Pure-JAX reference mirroring the kernel's bf16 quantization points."""
    w1, b1, w2, b2, w3, b3 = params
    q = lambda a: a.astype(jnp.bfloat16).astype(jnp.float32)
    h1 = jnp.maximum(q(x) @ q(w1) + b1, 0.0)
    h2 = jnp.maximum(q(h1) @ q(w2) + b2, 0.0)
    return jax.nn.sigmoid(h2 @ w3 + b3)


def reference_forward_f32(x, params):
    w1, b1, w2, b2, w3, b3 = params
    h1 = jnp.maximum(x @ w1 + b1, 0.0)
    h2 = jnp.maximum(h1 @ w2 + b2, 0.0)
    return jax.nn.sigmoid(h2 @ w3 + b3)


if __name__ == "__main__":
    key = jax.random.PRNGKey(0)
    key, kx = jax.random.split(key)

    batch, input_dim = 8, 32   # small shapes consistent with the tabular-feature MLP
    x = jax.random.normal(kx, (batch, input_dim), dtype=jnp.float32)
    params = init_params(key, input_dim)

    out = discriminator_forward(x, params)
    out = jax.block_until_ready(out)
    assert out.shape == (batch, 1)

    # Tight check against a reference with matching bf16 quantization.
    ref_bf = reference_forward_bf16(x, params)
    assert jnp.allclose(out, ref_bf, atol=2e-4, rtol=2e-4), "mismatch vs bf16-matched reference"

    # Loose sanity check against the pure-f32 module semantics.
    ref_f32 = reference_forward_f32(x, params)
    assert jnp.allclose(out, ref_f32, atol=3e-2, rtol=3e-2), "mismatch vs f32 reference"

    print("KERNEL_OK")
</pallas_src>

<mosaic_0001>
module attributes {stable_mosaic.version = 11 : i64} {
  func.func @discriminator_kernel(%arg0: i32, %arg1: memref<16x32xf32, #tpu.memory_space<vmem>>, %arg2: memref<32x256xbf16, #tpu.memory_space<vmem>>, %arg3: memref<1x256xf32, #tpu.memory_space<vmem>>, %arg4: memref<256x128xbf16, #tpu.memory_space<vmem>>, %arg5: memref<1x128xf32, #tpu.memory_space<vmem>>, %arg6: memref<1x128xf32, #tpu.memory_space<vmem>>, %arg7: memref<1x1xf32, #tpu.memory_space<vmem>>, %arg8: memref<16x1xf32, #tpu.memory_space<vmem>>) attributes {dimension_semantics = [#tpu.dimension_semantics<parallel>], iteration_bounds = array<i64: 1>, scalar_prefetch = 0 : i64, scratch_operands = 0 : i64, tpu.core_type = #tpu.core_type<tc>, window_params = [{transform_indices = @transform_0, window_bounds = array<i64: 16, 32>}, {pipeline_mode = #tpu.pipeline_mode<synchronous>, transform_indices = @transform_1, window_bounds = array<i64: 32, 256>}, {pipeline_mode = #tpu.pipeline_mode<synchronous>, transform_indices = @transform_2, window_bounds = array<i64: 1, 256>}, {pipeline_mode = #tpu.pipeline_mode<synchronous>, transform_indices = @transform_3, window_bounds = array<i64: 256, 128>}, {pipeline_mode = #tpu.pipeline_mode<synchronous>, transform_indices = @transform_4, window_bounds = array<i64: 1, 128>}, {pipeline_mode = #tpu.pipeline_mode<synchronous>, transform_indices = @transform_5, window_bounds = array<i64: 1, 128>}, {pipeline_mode = #tpu.pipeline_mode<synchronous>, transform_indices = @transform_6, window_bounds = array<i64: 1, 1>}, {transform_indices = @transform_7, window_bounds = array<i64: 16, 1>}]} {
    %c0 = arith.constant 0 : index
    %c0_0 = arith.constant 0 : index
    %0 = vector.load %arg1[%c0, %c0_0] : memref<16x32xf32, #tpu.memory_space<vmem>>, vector<16x32xf32>
    %1 = arith.truncf %0 : vector<16x32xf32> to vector<16x32xbf16>
    %c0_1 = arith.constant 0 : index
    %c0_2 = arith.constant 0 : index
    %2 = vector.load %arg2[%c0_1, %c0_2] : memref<32x256xbf16, #tpu.memory_space<vmem>>, vector<32x256xbf16>
    %cst = arith.constant dense<0.000000e+00> : vector<16x256xf32>
    %3 = tpu.matmul %1, %2, %cst {dimension_numbers = #tpu.dot_dimension_numbers<[1], [0], [0], [1], [0, 0, 1, 1], [], []>} : vector<16x32xbf16>, vector<32x256xbf16>, vector<16x256xf32> -> vector<16x256xf32>
    %c0_3 = arith.constant 0 : index
    %c0_4 = arith.constant 0 : index
    %4 = vector.load %arg3[%c0_3, %c0_4] : memref<1x256xf32, #tpu.memory_space<vmem>>, vector<1x256xf32>
    %5 = vector.broadcast %4 : vector<1x256xf32> to vector<16x256xf32>
    %6 = arith.addf %3, %5 : vector<16x256xf32>
    %cst_5 = arith.constant 0.000000e+00 : f32
    %7 = vector.broadcast %cst_5 : f32 to vector<16x256xf32>
    %8 = arith.maximumf %6, %7 : vector<16x256xf32>
    %9 = arith.truncf %8 : vector<16x256xf32> to vector<16x256xbf16>
    %c0_6 = arith.constant 0 : index
    %c0_7 = arith.constant 0 : index
    %10 = vector.load %arg4[%c0_6, %c0_7] : memref<256x128xbf16, #tpu.memory_space<vmem>>, vector<256x128xbf16>
    %cst_8 = arith.constant dense<0.000000e+00> : vector<16x128xf32>
    %11 = tpu.matmul %9, %10, %cst_8 {dimension_numbers = #tpu.dot_dimension_numbers<[1], [0], [0], [1], [0, 0, 1, 1], [], []>} : vector<16x256xbf16>, vector<256x128xbf16>, vector<16x128xf32> -> vector<16x128xf32>
    %c0_9 = arith.constant 0 : index
    %c0_10 = arith.constant 0 : index
    %12 = vector.load %arg5[%c0_9, %c0_10] : memref<1x128xf32, #tpu.memory_space<vmem>>, vector<1x128xf32>
    %13 = vector.broadcast %12 : vector<1x128xf32> to vector<16x128xf32>
    %14 = arith.addf %11, %13 : vector<16x128xf32>
    %cst_11 = arith.constant 0.000000e+00 : f32
    %15 = vector.broadcast %cst_11 : f32 to vector<16x128xf32>
    %16 = arith.maximumf %14, %15 : vector<16x128xf32>
    %c0_12 = arith.constant 0 : index
    %c0_13 = arith.constant 0 : index
    %17 = vector.load %arg6[%c0_12, %c0_13] : memref<1x128xf32, #tpu.memory_space<vmem>>, vector<1x128xf32>
    %18 = vector.broadcast %17 : vector<1x128xf32> to vector<16x128xf32>
    %19 = arith.mulf %16, %18 : vector<16x128xf32>
    %cst_14 = arith.constant dense<0.000000e+00> : vector<16xf32>
    %20 = vector.multi_reduction <add>, %19, %cst_14 [1] : vector<16x128xf32> to vector<16xf32>
    %21 = vector.shape_cast %20 : vector<16xf32> to vector<16x1xf32>
    %c0_15 = arith.constant 0 : index
    %c0_16 = arith.constant 0 : index
    %22 = vector.load %arg7[%c0_15, %c0_16] : memref<1x1xf32, #tpu.memory_space<vmem>>, vector<1x1xf32>
    %23 = vector.broadcast %22 : vector<1x1xf32> to vector<16x1xf32>
    %24 = arith.addf %21, %23 : vector<16x1xf32>
    %25 = arith.negf %24 : vector<16x1xf32>
    %26 = math.exp %25 : vector<16x1xf32>
    %cst_17 = arith.constant 1.000000e+00 : f32
    %27 = vector.broadcast %cst_17 : f32 to vector<16x1xf32>
    %28 = arith.addf %27, %26 : vector<16x1xf32>
    %29 = arith.divf %27, %28 : vector<16x1xf32>
    %c0_18 = arith.constant 0 : index
    %c0_19 = arith.constant 0 : index
    %30 = vector.load %arg8[%c0_18, %c0_19] : memref<16x1xf32, #tpu.memory_space<vmem>>, vector<16x1xf32>
    tpu.vector_store %arg8[%c0_18, %c0_19], %29 {strides = array<i32>} : memref<16x1xf32, #tpu.memory_space<vmem>>, vector<16x1xf32>,
    return
  }
  func.func @transform_0(%arg0: i32) -> (i32, i32) {
    %c0_i32 = arith.constant 0 : i32
    %c0_i32_0 = arith.constant 0 : i32
    return %arg0, %c0_i32 : i32, i32
  }
  func.func @transform_1(%arg0: i32) -> (i32, i32) {
    %c0_i32 = arith.constant 0 : i32
    %c0_i32_0 = arith.constant 0 : i32
    %c0_i32_1 = arith.constant 0 : i32
    return %c0_i32, %c0_i32_0 : i32, i32
  }
  func.func @transform_2(%arg0: i32) -> (i32, i32) {
    %c0_i32 = arith.constant 0 : i32
    %c0_i32_0 = arith.constant 0 : i32
    %c0_i32_1 = arith.constant 0 : i32
    return %c0_i32, %c0_i32_0 : i32, i32
  }
  func.func @transform_3(%arg0: i32) -> (i32, i32) {
    %c0_i32 = arith.constant 0 : i32
    %c0_i32_0 = arith.constant 0 : i32
    %c0_i32_1 = arith.constant 0 : i32
    return %c0_i32, %c0_i32_0 : i32, i32
  }
  func.func @transform_4(%arg0: i32) -> (i32, i32) {
    %c0_i32 = arith.constant 0 : i32
    %c0_i32_0 = arith.constant 0 : i32
    %c0_i32_1 = arith.constant 0 : i32
    return %c0_i32, %c0_i32_0 : i32, i32
  }
  func.func @transform_5(%arg0: i32) -> (i32, i32) {
    %c0_i32 = arith.constant 0 : i32
    %c0_i32_0 = arith.constant 0 : i32
    %c0_i32_1 = arith.constant 0 : i32
    return %c0_i32, %c0_i32_0 : i32, i32
  }
  func.func @transform_6(%arg0: i32) -> (i32, i32) {
    %c0_i32 = arith.constant 0 : i32
    %c0_i32_0 = arith.constant 0 : i32
    %c0_i32_1 = arith.constant 0 : i32
    return %c0_i32, %c0_i32_0 : i32, i32
  }
  func.func @transform_7(%arg0: i32) -> (i32, i32) {
    %c0_i32 = arith.constant 0 : i32
    %c0_i32_0 = arith.constant 0 : i32
    return %arg0, %c0_i32 : i32, i32
  }
}

</mosaic_0001>

<bundles_post_ra>
// kernel: tpu_custom_call.1
= control target key start
LH: loop header
LB: loop body
LE: loop exit
PB: predicated region body
PF: predicated region fallthrough
CT: control target
= control target key end

     0   :  { %s648_s0 = inlined_call_operand.hbm [shape: f32[16,32], index: 0, kind: input, shape index: {}]   ;;  %s649_s1 = inlined_call_operand.hbm [shape: bf16[32,256], index: 1, kind: input, shape index: {}]   ;;  %s650_s2 = inlined_call_operand.vmem [shape: f32[1,256], index: 2, kind: input, shape index: {}]   ;;  %s651_s3 = inlined_call_operand.hbm [shape: bf16[256,128], index: 3, kind: input, shape index: {}]   ;;  %s652_s4 = inlined_call_operand.vmem [shape: f32[1,128], index: 4, kind: input, shape index: {}]   ;;  %s653_s5 = inlined_call_operand.vmem [shape: f32[1,128], index: 5, kind: input, shape index: {}]   ;;  %s654_s6 = inlined_call_operand.<no memory space> [shape: f32[1,1], index: 6, kind: input, shape index: {}]   ;;  %s655_s7 = inlined_call_operand.vmem [shape: f32[16,1], index: 7, kind: output, shape index: {}]  }
   0x1   :  { %v12_v0 = vstv %s654_s6 }
   0x2   :  { %13 = vst [vmem:[#allocation2] sm:$0x1] %v12_v0 }
   0x3   :  { %14 = vsyncpa [#allocation4], 0 }
   0x4   :  { %15 = vsyncpa [#allocation6], 0  ;;  %s539_s26 = smov [#allocation5]   ;;  %s540_s28 = smov [#allocation3]  }
   0x5   :  { %s33_s27 = sshll.u32 %s539_s26, 4  ;;  %s21_s29 = sshll.u32 %s540_s28, 4  ;;  %s34_s27 = int_to_ptr.vmem [resolvable:$true] %s33_s27  ;;  %s590_s29 = int_to_ptr.vmem [resolvable:$true] %s21_s29 }
   0x6   :  { %s469_s9 = scalar_lea.hbm %s649_s1, 512 }
   0x7   :  { %p470_p0 = scmp.ne.s32.totalorder %s649_s1, %s469_s9  ;;  %p473_p1 = scmp.lt.u32.totalorder %s469_s9, %s649_s1 }
   0x9   :  { %p475_p2 = pnand %p473_p1, %p470_p0 }
   0xb   :  { %478 = shalt.err (!%p475_p2)
}
   0xc   :  { %s479_s13 = scalar_lea.vmem %s34_s27, 512  ;;  %p484_p4 = scmp.lt.s32.totalorder %s34_s27, %s34_s27 }
   0xd   :  { %p480_p3 = scmp.ne.s32.totalorder %s34_s27, %s479_s13  ;;  %p485_p5 = scmp.lt.s32.totalorder %s479_s13, %s479_s13 }
   0xf   :  { %p486_p6 = por %p485_p5, %p484_p4 }
  0x11   :  { %p487_p7 = pnand %p486_p6, %p480_p3 }
  0x13   :  { %490 = shalt.err (!%p487_p7)
}
  0x14   :  { %s541_s14 = smov 128   ;;  %s542_s15 = smov 8  }
  0x15   :  { %39 = dma.hbm_to_vmem [thread:$0]  %s649_s1, 512, %s34_s27, [#allocation6], %s541_s14, %s541_s14, %s542_s15  }
  0x16   :  { %s491_s20 = scalar_lea.hbm %s648_s0, 256 }
  0x17   :  { %p492_p8 = scmp.ne.s32.totalorder %s648_s0, %s491_s20  ;;  %p495_p9 = scmp.lt.u32.totalorder %s491_s20, %s648_s0 }
  0x19   :  { %p497_p10 = pnand %p495_p9, %p492_p8 }
  0x1b   :  { %500 = shalt.err (!%p497_p10)
}
  0x1c   :  { %s501_s25 = scalar_lea.vmem %s590_s29, 256  ;;  %p506_p12 = scmp.lt.s32.totalorder %s590_s29, %s590_s29 }
  0x1d   :  { %p502_p11 = scmp.ne.s32.totalorder %s590_s29, %s501_s25  ;;  %p507_p13 = scmp.lt.s32.totalorder %s501_s25, %s501_s25 }
  0x1f   :  { %p508_p0 = por %p507_p13, %p506_p12 }
  0x21   :  { %p509_p1 = pnand %p508_p0, %p502_p11 }
  0x23   :  { %512 = shalt.err (!%p509_p1)
}
  0x24   :  { %27 = dma.hbm_to_vmem [thread:$0]  %s648_s0, 256, %s590_s29, [#allocation4], %s541_s14, %s541_s14, %s542_s15  }
  0x25   :  { %s543_s27 = smov [#allocation7]   ;;  %s513_s9 = scalar_lea.hbm %s651_s3, 2048 }
  0x26   :  { %s47_s28 = sshll.u32 %s543_s27, 4  ;;  %p514_p2 = scmp.ne.s32.totalorder %s651_s3, %s513_s9  ;;  %s48_s28 = int_to_ptr.vmem [resolvable:$true] %s47_s28 }
  0x27   :  { %p517_p3 = scmp.lt.u32.totalorder %s513_s9, %s651_s3 }
  0x29   :  { %p519_p4 = pnand %p517_p3, %p514_p2 }
  0x2b   :  { %522 = shalt.err (!%p519_p4)
}
  0x2c   :  { %s523_s13 = scalar_lea.vmem %s48_s28, 2048  ;;  %p528_p6 = scmp.lt.s32.totalorder %s48_s28, %s48_s28 }
  0x2d   :  { %p524_p5 = scmp.ne.s32.totalorder %s48_s28, %s523_s13  ;;  %p529_p7 = scmp.lt.s32.totalorder %s523_s13, %s523_s13 }
  0x2f   :  { %p530_p8 = por %p529_p7, %p528_p6 }
  0x31   :  { %p531_p9 = pnand %p530_p8, %p524_p5 }
  0x33   :  { %534 = shalt.err (!%p531_p9)
}
  0x34   :  { %s544_s0 = smov 64   ;;  %s545_s29 = smov 4  }
  0x35   :  { %53 = dma.hbm_to_vmem [thread:$0]  %s651_s3, 2048, %s48_s28, [#allocation6], %s544_s0, %s544_s0, %s545_s29  }
  0x36   :  { %535 = dma.done.wait [#allocation4], 256  }
  0x37   :  { %536 = vsyncadd [#allocation4], 4294967040 }
  0x38   :  { %537 = dma.done.wait [#allocation6], 2560  }
  0x39   :  { %538 = vsyncadd [#allocation6], 4294964736  ;;  %v546_v1 = vmov 0   ;;  %v439_v2 = vld [vmem:[#allocation5 + $0x4] ss:$8 sps:$4 sm:$0xff]   ;;  %v70_v6 = vld [vmem:[#allocation3] sm:$0xff]  ;;  %v79_v25 = vlaneseq }
  0x3a   :  { %145 = vmatprep.mubr.bf16.mxu0 %v546_v1  ;;  %v441_v3 = vld [vmem:[#allocation5] ss:$8 sps:$4 sm:$0xff]   ;;  %113 = vmatprep.subr.bf16.mxu0 %v439_v2  ;;  %v442_v4 = vld [vmem:[#allocation5 + $0x14] ss:$8 sps:$4 sm:$0xff]   ;;  %v444_v5 = vld [vmem:[#allocation5 + $0x10] ss:$8 sps:$4 sm:$0xff]  }
  0x3b   :  { %114 = vmatpush1.bf16.msra.mxu0 %v441_v3  ;;  %v71_v7 = vld [vmem:[#allocation3 + $0x8] sm:$0xff]  ;;  %v445_v8 = vld [vmem:[#allocation7 + $0x40] sm:$0xff]   ;;  %v447_v11 = vld [vmem:[#allocation7 + $0x48] sm:$0xff]   ;;  %vm109_vm0 = vcmask 261120   ;;  %v80_v26 = vshrl.u32 %v79_v25, 7  ;;  %vm374_vm1 = vcmask 7168  }
  0x3c   :  { %115 = vmatprep.subr.bf16.mxu0 %v442_v4  ;;  %v446_v9 = vld [vmem:[#allocation7] sm:$0xff]   ;;  %v72_v10 = vpack.c.bf16 %v71_v7, %v70_v6  ;;  %409 = vmatprep.subr.bf16.mxu1 %v445_v8  ;;  %v448_v12 = vld [vmem:[#allocation7 + $0x8] sm:$0xff]   ;;  %v449_v13 = vld [vmem:[#allocation7 + $0x50] sm:$0xff]  }
  0x3d   :  { %410 = vmatpush3.bf16.msra.mxu1 %v446_v9  ;;  %v450_v14 = vld [vmem:[#allocation7 + $0x10] sm:$0xff]   ;;  %v451_v15 = vld [vmem:[#allocation7 + $0x58] sm:$0xff]   ;;  %v453_v17 = vld [vmem:[#allocation7 + $0x60] sm:$0xff]   ;;  %v81_v27 = vsub.s32 0, %v80_v26  ;;  %v85_v29 = vsub.s32 1, %v80_v26 }
  0x3e   :  { %411 = vmatprep.subr.bf16.mxu1 %v447_v11  ;;  %v452_v16 = vld [vmem:[#allocation7 + $0x18] sm:$0xff]   ;;  %v454_v18 = vld [vmem:[#allocation7 + $0x20] sm:$0xff]   ;;  %v455_v19 = vld [vmem:[#allocation7 + $0x68] sm:$0xff]  }
  0x3f   :  { %116 = vmatpush1.bf16.msra.mxu0 %v444_v5  ;;  %v456_v20 = vld [vmem:[#allocation7 + $0x28] sm:$0xff]   ;;  %v457_v21 = vld [vmem:[#allocation7 + $0x70] sm:$0xff]   ;;  %v459_v23 = vld [vmem:[#allocation7 + $0x78] sm:$0xff]  }
  0x40   :  { %v458_v22 = vld [vmem:[#allocation7 + $0x30] sm:$0xff]   ;;  %v460_v24 = vld [vmem:[#allocation7 + $0x38] sm:$0xff]   ;;  %v388_v48 = vld [vmem:[%s652_s4] ss:$0 sm:$0xff] }
  0x41   :  { %412 = vmatpush3.bf16.msra.mxu1 %v448_v12  ;;  %v77_v28 = vld [vmem:[%s650_s2] sm:$0x3] }
  0x42   :  { %387 = vmatmul.mubr.msk.bf16.vlgmr.msra.gmra.mrb[0].mxu0 %vm109_vm0, %v72_v10  ;;  %413 = vmatprep.subr.bf16.mxu1 %v449_v13  ;;  %v82_v30 = vrot.slane %v77_v28, %v81_v27  ;;  %v86_v31 = vrot.slane %v77_v28, %v85_v29  ;;  %v405_v54 = vld [vmem:[%s653_s5] ss:$0 sm:$0xff] }
  0x43   :  { %v406_v60 = vld [vmem:[#allocation2] ss:$0 sm:$0xff] }
  0x45   :  { %414 = vmatpush3.bf16.msra.mxu1 %v450_v14 }
  0x46   :  { %415 = vmatprep.subr.bf16.mxu1 %v451_v15 }
  0x49   :  { %416 = vmatpush3.bf16.msra.mxu1 %v452_v16 }
  0x4a   :  { %417 = vmatprep.subr.bf16.mxu1 %v453_v17 }
  0x4d   :  { %418 = vmatpush3.bf16.msra.mxu1 %v454_v18 }
  0x4e   :  { %419 = vmatprep.subr.bf16.mxu1 %v455_v19 }
  0x51   :  { %420 = vmatpush3.bf16.msra.mxu1 %v456_v20 }
  0x52   :  { %421 = vmatprep.subr.bf16.mxu1 %v457_v21 }
  0x55   :  { %422 = vmatpush3.bf16.msra.mxu1 %v458_v22 }
  0x56   :  { %423 = vmatprep.subr.bf16.mxu1 %v459_v23 }
  0x59   :  { %424 = vmatpush3.bf16.msra.mxu1 %v460_v24 }
 0x115   :  { %v147_v32 = vpop.f32.mrb[0].mxu0 }
 0x116   :  { %v148_v33 = vadd.f32 %v147_v32, %v82_v30  ;;  %v149_v34 = vpop.f32.mrb[1].mxu0 }
 0x117   :  { %v150_v35 = vadd.f32 %v149_v34, %v86_v31  ;;  %v151_v36 = vpop.f32.mrb[2].mxu0 }
 0x118   :  { %v152_v37 = vadd.f32 %v151_v36, %v82_v30  ;;  %v153_v38 = vpop.f32.mrb[3].mxu0  ;;  %v156_v40 = vmax.f32 %v148_v33, 0.0 }
 0x119   :  { %v154_v39 = vadd.f32 %v153_v38, %v86_v31  ;;  %v157_v42 = vmax.f32 %v150_v35, 0.0 }
 0x11a   :  { %v158_v41 = vmax.f32 %v152_v37, 0.0 }
 0x11b   :  { %v159_v43 = vmax.f32 %v154_v39, 0.0 }
 0x11c   :  { %v160_v44 = vpack.c.bf16 %v158_v41, %v156_v40 }
 0x11d   :  { %v161_v45 = vpack.c.bf16 %v159_v43, %v157_v42 }
 0x11f   :  { %329 = vmatprep.mubr.bf16.mxu1 %v161_v45 }
 0x120   :  { %330 = vmatmul.mubr.bf16.vlgmr.msra.gmra.mrb[0].mxu1 %v160_v44 }
 0x1f3   :  { %v425_v46 = vpop.f32.mrb[0].mxu1 }
 0x1f4   :  { %v426_v47 = vpop.f32.mrb[1].mxu1 }
 0x1f5   :  { %v427_v49 = vadd.f32 %v426_v47, %v425_v46  ;;  %v428_v50 = vpop.f32.mrb[2].mxu1 }
 0x1f6   :  { %v429_v51 = vpop.f32.mrb[3].mxu1 }
 0x1f7   :  { %v430_v52 = vadd.f32 %v429_v51, %v428_v50  ;;  %v332_v53 = vadd.f32 %v427_v49, %v388_v48 }
 0x1f9   :  { %v335_v55 = vadd.f32 %v430_v52, %v388_v48  ;;  %v338_v56 = vmax.f32 %v332_v53, 0.0 }
 0x1fb   :  { %v339_v57 = vmax.f32 %v335_v55, 0.0  ;;  %v347_v58 = vmul.f32 %v405_v54, %v338_v56 }
 0x1fd   :  { %349 = vadd.xlane.f32.xlu0 %v347_v58  ;;  %v348_v59 = vmul.f32 %v405_v54, %v339_v57 }
 0x201   :  { %351 = vadd.xlane.f32.xlu0 %v348_v59 }
 0x28a   :  { %v350_v61 = vpop.xlane.xlu0 %349 }
 0x28b   :  { %v360_v62 = vadd.f32 %v406_v60, %v350_v61 }
 0x28d   :  { %v407_v63 = vmul.f32 -1.442695, %v360_v62 }
 0x28e   :  { %v352_v0 = vpop.xlane.xlu0 %351 }
 0x28f   :  { %461 = vpow2.f32 %v407_v63  ;;  %v361_v1 = vadd.f32 %v406_v60, %v352_v0 }
 0x291   :  { %v408_v2 = vmul.f32 -1.442695, %v361_v1 }
 0x293   :  { %463 = vpow2.f32 %v408_v2 }
 0x299   :  { %v462_v3 = vpop.eup %461 }
 0x29a   :  { %v368_v4 = vadd.f32 1.0, %v462_v3 }
 0x29c   :  { %465 = vrcp.f32 %v368_v4 }
 0x29d   :  { %v464_v5 = vpop.eup %463 }
 0x29e   :  { %v369_v6 = vadd.f32 1.0, %v464_v5 }
 0x2a0   :  { %467 = vrcp.f32 %v369_v6 }
 0x2a6   :  { %v466_v7 = vpop.eup %465 }
 0x2a7   :  { %375 = vst.msk [vmem:[%s655_s7] sm:$0xff] %vm374_vm1, %v466_v7 }
 0x2aa   :  { %v468_v8 = vpop.eup %467 }
 0x2ab   :  { %376 = vst.msk [vmem:[%s655_s7 + $0x8] sm:$0xff] %vm374_vm1, %v468_v8 }
 0x2ac   :  { %381 = vsyncpa [#allocation4], 1 }
 0x2ad   :  { %382 = vsyncpa [#allocation6], 1 }

</bundles_post_ra>
